<compile_context>
chip_gen: v7x
topology: tpu7x:2x2x1
jax: 0.10.0
libtpu: 0.0.40
codegen_flags: <defaults>
</compile_context>

<pallas_src>
import functools
import math

import jax
import jax.numpy as jnp
from jax import lax
from jax.experimental import pallas as pl
from jax.experimental.pallas import tpu as pltpu


def _pair(v):
    if isinstance(v, (tuple, list)):
        return int(v[0]), int(v[1])
    return int(v), int(v)


def _same_pad_amounts(h, w, kernel_size, stride):
    """TF-'same' padding amounts; identical math to PadSameConv2d.forward."""
    ky, kx = _pair(kernel_size)
    sy, sx = _pair(stride)
    py = (sy * (math.ceil(h / sy) - 1) + ky - h) / 2
    px = (sx * (math.ceil(w / sx) - 1) + kx - w) / 2
    # F.pad order: (left, right, top, bottom)
    return math.floor(px), math.ceil(px), math.floor(py), math.ceil(py)


def _round_up(v, m):
    return ((v + m - 1) // m) * m


def _conv_relu_kernel(x_ref, w_ref, b_ref, o_ref, *, tap_shifts, neg_slope):
    """One sample per grid step.

    x_ref: (1, Cin, L_in)        flattened, padded input (lane-dense)
    w_ref: (Cout, Ky*Kx*Cin)     fused weight (f32)
    b_ref: (Cout, 1)             bias (f32)
    o_ref: (1, Cout, L_out_pad)  lane-dense output (multiple of 128 lanes)
    """
    l_out = o_ref.shape[2]
    x = x_ref[0]                                             # (Cin, L_in)
    # Stack the Ky*Kx lane-shifted tap slices along the contraction axis:
    # a single MXU matmul of depth Ky*Kx*Cin, accumulation stays in the MXU.
    xs = jnp.concatenate([x[:, s:s + l_out] for s in tap_shifts], axis=0)
    # Default precision: single-pass bf16 MXU with f32 accumulation.
    y = jnp.dot(w_ref[...], xs, preferred_element_type=jnp.float32)
    y = y + b_ref[...]                                       # (Cout, L_out_pad)
    y = jnp.where(y >= 0, y, neg_slope * y)                  # fused LeakyReLU
    o_ref[0] = y.astype(o_ref.dtype)


def conv_relu(x, weight, bias, *, stride=1, negative_slope=0.1):
    """Pallas equivalent of ConvReLU.forward for NCHW inputs."""
    n, cin, h, w = x.shape
    cout, cin_w, ky, kx = weight.shape
    assert cin_w == cin
    sy, sx = _pair(stride)

    # ---- PadSameConv2d, merged with the flat tail pad into ONE jnp.pad ----
    pad_l, pad_r, pad_t, pad_b = _same_pad_amounts(h, w, (ky, kx), (sy, sx))
    crop_t, crop_b = max(-pad_t, 0), max(-pad_b, 0)
    crop_l, crop_r = max(-pad_l, 0), max(-pad_r, 0)
    if crop_t or crop_b or crop_l or crop_r:                 # rare negative pad
        x = x[:, :, crop_t:h - crop_b, crop_l:w - crop_r]
    pad_t, pad_b = max(pad_t, 0), max(pad_b, 0)
    pad_l, pad_r = max(pad_l, 0), max(pad_r, 0)
    hc, wc = x.shape[2], x.shape[3]
    hp = hc + pad_t + pad_b                                  # same-padded height
    wp = wc + pad_l + pad_r                                  # same-padded width

    ho = (hp - ky) // sy + 1                                 # true conv output
    wo = (wp - kx) // sx + 1
    ho_full = hp - ky + 1                                    # stride-1 rows in kernel
    l_out = ho_full * wp
    l_out_pad = _round_up(max(l_out, 128), 128)              # lane-dense output
    # Tail rows so every tap slice [shift, shift + l_out_pad) stays in range.
    needed_tail = (kx - 1) + (l_out_pad - l_out)
    extra_rows = -(-needed_tail // wp)
    xp = jnp.pad(x, ((0, 0), (0, 0),
                     (pad_t, pad_b + extra_rows), (pad_l, pad_r)))
    l_in = xp.shape[2] * wp
    x_flat = xp.reshape(n, cin, l_in)

    # Fused weight: (Cout, Ky*Kx*Cin), tap-major (dy, dx), channel-minor --
    # matches the in-kernel stacking order of the shifted slices.
    w_fused = jnp.transpose(weight, (0, 2, 3, 1)).reshape(cout, ky * kx * cin)
    w_fused = w_fused.astype(jnp.float32)
    b2d = bias.reshape(cout, 1).astype(jnp.float32)
    tap_shifts = tuple(dy * wp + dx for dy in range(ky) for dx in range(kx))

    kernel = functools.partial(_conv_relu_kernel,
                               tap_shifts=tap_shifts,
                               neg_slope=float(negative_slope))

    itemsize = x.dtype.itemsize
    flops = 2 * n * cout * (ky * kx * cin) * l_out_pad
    bytes_accessed = (n * cin * l_in * itemsize + w_fused.size * 4
                      + b2d.size * 4 + n * cout * l_out_pad * itemsize)
    # VMEM: double-buffered in/out blocks + weights + stacked operand + result.
    vmem_est = (2 * (cin * l_in + cout * l_out_pad) * itemsize
                + w_fused.size * 4 + b2d.size * 4
                + (ky * kx * cin + cout) * l_out_pad * 4)
    vmem_limit = int(min(max(2 * vmem_est, 8 << 20), 48 << 20))  # v7x-safe cap

    out_flat = pl.pallas_call(
        kernel,
        out_shape=jax.ShapeDtypeStruct((n, cout, l_out_pad), x.dtype),
        grid=(n,),
        in_specs=[
            pl.BlockSpec((1, cin, l_in), lambda i: (i, 0, 0)),
            pl.BlockSpec((cout, ky * kx * cin), lambda i: (0, 0)),
            pl.BlockSpec((cout, 1), lambda i: (0, 0)),
        ],
        out_specs=pl.BlockSpec((1, cout, l_out_pad), lambda i: (i, 0, 0)),
        compiler_params=pltpu.CompilerParams(
            dimension_semantics=("parallel",),
            vmem_limit_bytes=vmem_limit,
        ),
        cost_estimate=pl.CostEstimate(
            flops=flops, transcendentals=0, bytes_accessed=bytes_accessed),
    )(x_flat, w_fused, b2d)

    # TODO(synk): for very large planes (v7x: 64 MiB VMEM) add a second grid
    # axis over Hp row-chunks with a (ky-1)-row halo; that also provides >=4
    # grid steps on v7x when N is small.
    # TODO(synk): for stride > 1 compute only every sy-th row / sx-th column
    # in-kernel (strided lane slices) instead of subsampling the stride-1
    # plane here.
    out = out_flat[:, :, :l_out].reshape(n, cout, ho_full, wp)
    out = out[:, :, 0:(ho - 1) * sy + 1:sy, 0:(wo - 1) * sx + 1:sx]
    return out


# ----------------------------- reference ------------------------------------
def _pad_same(x, kernel_size, stride):
    pad_l, pad_r, pad_t, pad_b = _same_pad_amounts(
        x.shape[2], x.shape[3], kernel_size, stride)
    x = jnp.pad(x, ((0, 0), (0, 0),
                    (max(pad_t, 0), max(pad_b, 0)),
                    (max(pad_l, 0), max(pad_r, 0))))
    hs, he = max(-pad_t, 0), x.shape[2] - max(-pad_b, 0)
    ws, we = max(-pad_l, 0), x.shape[3] - max(-pad_r, 0)
    return x[:, :, hs:he, ws:we]


def _reference(x, weight, bias, *, stride=1, negative_slope=0.1):
    """Plain-JAX full-precision (HIGHEST) reference of ConvReLU.forward."""
    sy, sx = _pair(stride)
    ky, kx = weight.shape[2], weight.shape[3]
    xp = _pad_same(x, (ky, kx), (sy, sx)).astype(jnp.float32)
    y = lax.conv_general_dilated(
        xp, weight.astype(jnp.float32),
        window_strides=(sy, sx), padding="VALID",
        dimension_numbers=("NCHW", "OIHW", "NCHW"),
        precision=lax.Precision.HIGHEST)
    y = y + bias.astype(jnp.float32).reshape(1, -1, 1, 1)
    y = jnp.where(y >= 0, y, negative_slope * y)
    return y.astype(x.dtype)


if __name__ == "__main__":
    key = jax.random.PRNGKey(0)
    k1, k2, k3 = jax.random.split(key, 3)

    N, CIN, COUT, H, W, K = 2, 4, 8, 16, 16, 3
    x = jax.random.normal(k1, (N, CIN, H, W), dtype=jnp.float32)
    weight = jax.random.normal(k2, (COUT, CIN, K, K), dtype=jnp.float32)
    weight = weight / math.sqrt(CIN * K * K)
    bias = jax.random.normal(k3, (COUT,), dtype=jnp.float32) * 0.1

    out = conv_relu(x, weight, bias, stride=1, negative_slope=0.1)
    out = jax.block_until_ready(out)

    ref = _reference(x, weight, bias, stride=1, negative_slope=0.1)
    assert out.shape == (N, COUT, H, W), out.shape
    # Kernel uses default (bf16-in / f32-acc) MXU precision per the perf
    # review; compare against a full-precision reference with a matching
    # tolerance.
    max_err = float(jnp.max(jnp.abs(out - ref)))
    assert jnp.allclose(out, ref, atol=2e-2, rtol=2e-2), f"mismatch: {max_err}"

    print("KERNEL_OK")
</pallas_src>

<mosaic_0001>
module attributes {stable_mosaic.version = 11 : i64} {
  func.func @_conv_relu_kernel(%arg0: i32, %arg1: memref<1x4x432xf32, #tpu.memory_space<vmem>>, %arg2: memref<8x36xf32, #tpu.memory_space<vmem>>, %arg3: memref<8x1xf32, #tpu.memory_space<vmem>>, %arg4: memref<1x8x384xf32, #tpu.memory_space<vmem>>) attributes {dimension_semantics = [#tpu.dimension_semantics<parallel>], iteration_bounds = array<i64: 2>, scalar_prefetch = 0 : i64, scratch_operands = 0 : i64, tpu.core_type = #tpu.core_type<tc>, window_params = [{transform_indices = @transform_0, window_bounds = array<i64: 1, 4, 432>}, {pipeline_mode = #tpu.pipeline_mode<synchronous>, transform_indices = @transform_1, window_bounds = array<i64: 8, 36>}, {pipeline_mode = #tpu.pipeline_mode<synchronous>, transform_indices = @transform_2, window_bounds = array<i64: 8, 1>}, {transform_indices = @transform_3, window_bounds = array<i64: 1, 8, 384>}]} {
    %c0 = arith.constant 0 : index
    %c0_0 = arith.constant 0 : index
    %c0_1 = arith.constant 0 : index
    %0 = vector.load %arg1[%c0, %c0_0, %c0_1] : memref<1x4x432xf32, #tpu.memory_space<vmem>>, vector<1x4x432xf32>
    %1 = vector.shape_cast %0 : vector<1x4x432xf32> to vector<4x432xf32>
    %2 = vector.extract_strided_slice %1 {offsets = [0, 0], sizes = [4, 384], strides = [1, 1]} : vector<4x432xf32> to vector<4x384xf32>
    %3 = vector.extract_strided_slice %1 {offsets = [0, 1], sizes = [4, 384], strides = [1, 1]} : vector<4x432xf32> to vector<4x384xf32>
    %4 = vector.extract_strided_slice %1 {offsets = [0, 2], sizes = [4, 384], strides = [1, 1]} : vector<4x432xf32> to vector<4x384xf32>
    %5 = vector.extract_strided_slice %1 {offsets = [0, 18], sizes = [4, 384], strides = [1, 1]} : vector<4x432xf32> to vector<4x384xf32>
    %6 = vector.extract_strided_slice %1 {offsets = [0, 19], sizes = [4, 384], strides = [1, 1]} : vector<4x432xf32> to vector<4x384xf32>
    %7 = vector.extract_strided_slice %1 {offsets = [0, 20], sizes = [4, 384], strides = [1, 1]} : vector<4x432xf32> to vector<4x384xf32>
    %8 = vector.extract_strided_slice %1 {offsets = [0, 36], sizes = [4, 384], strides = [1, 1]} : vector<4x432xf32> to vector<4x384xf32>
    %9 = vector.extract_strided_slice %1 {offsets = [0, 37], sizes = [4, 384], strides = [1, 1]} : vector<4x432xf32> to vector<4x384xf32>
    %10 = vector.extract_strided_slice %1 {offsets = [0, 38], sizes = [4, 384], strides = [1, 1]} : vector<4x432xf32> to vector<4x384xf32>
    %11 = tpu.concatenate %2, %3, %4, %5, %6, %7, %8, %9, %10 in 0 : vector<4x384xf32>, vector<4x384xf32>, vector<4x384xf32>, vector<4x384xf32>, vector<4x384xf32>, vector<4x384xf32>, vector<4x384xf32>, vector<4x384xf32>, vector<4x384xf32> -> vector<36x384xf32>
    %c0_2 = arith.constant 0 : index
    %c0_3 = arith.constant 0 : index
    %12 = vector.load %arg2[%c0_2, %c0_3] : memref<8x36xf32, #tpu.memory_space<vmem>>, vector<8x36xf32>
    %cst = arith.constant dense<0.000000e+00> : vector<8x384xf32>
    %13 = tpu.matmul %12, %11, %cst {dimension_numbers = #tpu.dot_dimension_numbers<[1], [0], [0], [1], [0, 0, 1, 1], [], []>} : vector<8x36xf32>, vector<36x384xf32>, vector<8x384xf32> -> vector<8x384xf32>
    %c0_4 = arith.constant 0 : index
    %c0_5 = arith.constant 0 : index
    %14 = vector.load %arg3[%c0_4, %c0_5] : memref<8x1xf32, #tpu.memory_space<vmem>>, vector<8x1xf32>
    %15 = vector.broadcast %14 : vector<8x1xf32> to vector<8x384xf32>
    %16 = arith.addf %13, %15 : vector<8x384xf32>
    %cst_6 = arith.constant 0.000000e+00 : f32
    %17 = vector.broadcast %cst_6 : f32 to vector<8x384xf32>
    %18 = arith.cmpf oge, %16, %17 : vector<8x384xf32>
    %cst_7 = arith.constant 1.000000e-01 : f32
    %19 = vector.broadcast %cst_7 : f32 to vector<8x384xf32>
    %20 = arith.mulf %19, %16 : vector<8x384xf32>
    %21 = arith.select %18, %16, %20 : vector<8x384xi1>, vector<8x384xf32>
    %c0_8 = arith.constant 0 : index
    %c0_9 = arith.constant 0 : index
    %c0_10 = arith.constant 0 : index
    %22 = vector.load %arg4[%c0_8, %c0_9, %c0_10] : memref<1x8x384xf32, #tpu.memory_space<vmem>>, vector<1x8x384xf32>
    %23 = vector.shape_cast %22 : vector<1x8x384xf32> to vector<8x384xf32>
    %24 = vector.shape_cast %21 : vector<8x384xf32> to vector<1x8x384xf32>
    tpu.vector_store %arg4[%c0_8, %c0_9, %c0_10], %24 {strides = array<i32>} : memref<1x8x384xf32, #tpu.memory_space<vmem>>, vector<1x8x384xf32>,
    return
  }
  func.func @transform_0(%arg0: i32) -> (i32, i32, i32) {
    %c0_i32 = arith.constant 0 : i32
    %c0_i32_0 = arith.constant 0 : i32
    %c0_i32_1 = arith.constant 0 : i32
    return %arg0, %c0_i32, %c0_i32_0 : i32, i32, i32
  }
  func.func @transform_1(%arg0: i32) -> (i32, i32) {
    %c0_i32 = arith.constant 0 : i32
    %c0_i32_0 = arith.constant 0 : i32
    %c0_i32_1 = arith.constant 0 : i32
    return %c0_i32, %c0_i32_0 : i32, i32
  }
  func.func @transform_2(%arg0: i32) -> (i32, i32) {
    %c0_i32 = arith.constant 0 : i32
    %c0_i32_0 = arith.constant 0 : i32
    %c0_i32_1 = arith.constant 0 : i32
    return %c0_i32, %c0_i32_0 : i32, i32
  }
  func.func @transform_3(%arg0: i32) -> (i32, i32, i32) {
    %c0_i32 = arith.constant 0 : i32
    %c0_i32_0 = arith.constant 0 : i32
    %c0_i32_1 = arith.constant 0 : i32
    return %arg0, %c0_i32, %c0_i32_0 : i32, i32, i32
  }
}

</mosaic_0001>

<bundles_post_ra>
// kernel: tpu_custom_call.1
= control target key start
LH: loop header
LB: loop body
LE: loop exit
PB: predicated region body
PF: predicated region fallthrough
CT: control target
= control target key end

     0   :  { %8 = vsyncpa [#allocation3], 0  ;;  %s1135_s0 = inlined_call_operand.hbm [shape: f32[2,4,432], index: 0, kind: input, shape index: {}]   ;;  %s1136_s1 = inlined_call_operand.vmem [shape: f32[8,36], index: 1, kind: input, shape index: {}]   ;;  %s1137_s2 = inlined_call_operand.vmem [shape: f32[8,1], index: 2, kind: input, shape index: {}]   ;;  %s1138_s3 = inlined_call_operand.hbm [shape: f32[2,8,384], index: 3, kind: output, shape index: {}]  }
   0x1   :  { %10 = vsyncpa [#allocation3 + $0x1], 0 }
   0x2   :  { %11 = vsyncpa [#allocation4], 0 }
   0x3   :  { %13 = vsyncpa [#allocation4 + $0x1], 0  ;;  %s898_s12 = smov 0   ;;  %s900_s13 = smov 0  }
   0x4   :  { %s902_s14 = smov 0   ;;  %s904_s15 = smov 0  }
   0x5 LB: > { %s919_s16 = sadd.s32 4294967295, %s862_s15   ;;  %s581_s17 = sadd.s32 4294967294, %s862_s15   ;;  %s862_s15 = sphi %s904_s15, %s1153_s15   ;;  %s858_s14 = sphi %s902_s14, %s1152_s14   ;;  %s854_s13 = sphi %s900_s13, %s1151_s13   ;;  %s850_s12 = sphi %s898_s12, %s1150_s12  }
   0x6   : > { %s923_s18 = sadd.s32 1, %s862_s15   ;;  %s26_s19 = sadd.s32 1, %s858_s14 }
   0x7   : > { %s23_s20 = ssub.s32 %s862_s15, %s923_s18  ;;  %p33_p0 = scmp.ne.s32.totalorder %s858_s14, %s854_s13 }
   0x8   : > { %p24_p1 = scmp.eq.s32.totalorder %s23_s20, 0  ;;  %p34_p2 = scmp.eq.s32.totalorder %s862_s15, 0 }
   0x9   : > { %p39_p3 = scmp.ne.s32.totalorder %s854_s13, %s850_s12  ;;  %p40_p4 = scmp.eq.s32.totalorder %s919_s16, 0 }
   0xa   : > { %s935_s21 = scalar_select %p24_p1, %s858_s14, %s26_s19  }
   0xb   : > { %p937_p5 = por %p34_p2, %p33_p0  ;;  %p941_p6 = por %p40_p4, %p39_p3 }
   0xc   : > { %p105_p7 = scmp.eq.s32.totalorder %s919_s16, 1  ;;  %p111_p8 = scmp.eq.s32.totalorder %s581_s17, 1 }
   0xd   : > { %p645_p10 = scmp.lt.s32.totalorder %s862_s15, 2  ;;  %s137_s26 = sand.u32 1, %s858_s14  }
   0xe   : > { %p948_p11 = por %p105_p7, %p33_p0  ;;  %p952_p12 = por %p111_p8, %p39_p3 }
   0xf   : > { %s597_s27 = sshll.u32 %s862_s15, 8  ;;  %s584_s28 = sshll.u32 %s137_s26, 4 }
  0x10   : > { %s1142_s24 = scalar_select %p948_p11, 1, 0 }
  0x11   : > { %s1143_s25 = scalar_select %p952_p12, 1, 0 }
  0x12   : > { %s961_s4 = scalar_lea.hbm %s1135_s0, %s597_s27  ;;  %s141_s5 = scalar_lea.vmem [#allocation2], %s584_s28 }
  0x13   : > { %s149_s6 = sshll.u32 %s141_s5, 4  ;;  %p965_p13 = pnand %p645_p10, %p937_p5  ;;  %s969_s6 = int_to_ptr.vmem [resolvable:$true] %s149_s6 }
  0x14   : > { %s138_s8 = scalar_lea.sflag [#allocation3], %s137_s26  ;;  %s766_s9 = scalar_lea.hbm %s961_s4, 256 }
  0x15   : > { %p767_p2 = scmp.ne.s32.totalorder %s961_s4, %s766_s9  ;;  %p768_p3 = pneg %p965_p13 }
  0x16   : > { %s771_s17 = scalar_lea.hbm %s1135_s0, 512  ;;  %p772_p5 = scmp.lt.u32.totalorder %s961_s4, %s1135_s0 }
  0x17   : > { %p769_p4 = pnand %p768_p3, %p767_p2  ;;  %p773_p8 = scmp.lt.u32.totalorder %s771_s17, %s766_s9 }
  0x18   : > { %p775_p9 = scmp.lt.u32.totalorder %s766_s9, %s961_s4 }
  0x19   : > { %p770_p7 = pneg %p769_p4  ;;  %p774_p10 = por %p773_p8, %p772_p5 }
  0x1b   : > { %p776_p0 = por %p775_p9, %p774_p10 }
  0x1d   : > { %p777_p1 = pnand %p776_p0, %p770_p7 }
  0x1f   : > { %780 = shalt.err (!%p777_p1)
}
  0x20   : > { %s781_s22 = scalar_lea.vmem %s969_s6, 256  ;;  %s864_s26 = smov [#allocation2]  }
  0x21   : > { %p782_p2 = scmp.ne.s32.totalorder %s969_s6, %s781_s22  ;;  %s786_s27 = sshll.u32 %s864_s26, 4  ;;  %s787_s27 = int_to_ptr.vmem [resolvable:$false] %s786_s27 }
  0x22   : > { %s788_s28 = scalar_lea.vmem %s787_s27, 512  ;;  %p789_p11 = scmp.lt.s32.totalorder %s969_s6, %s787_s27 }
  0x23   : > { %p784_p4 = pnand %p782_p2, %p768_p3  ;;  %p790_p5 = scmp.lt.s32.totalorder %s788_s28, %s781_s22 }
  0x25   : > { %p785_p12 = pneg %p784_p4  ;;  %p791_p8 = por %p790_p5, %p789_p11 }
  0x27   : > { %p792_p9 = pnand %p791_p8, %p785_p12 }
  0x29   : > { %795 = shalt.err (!%p792_p9)
}
  0x2a   : > { %640 = dma.hbm_to_vmem [thread:$0]  (!%p965_p13), %s961_s4, 256, %s969_s6, %s138_s8  }
  0x2b   : > { %p1145_p0 = scmp.lt.s32.totalorder %s862_s15, 3  ;;  %p1146_p1 = scmp.ge.s32.totalorder %s862_s15, 1 }
  0x2d   : > { %p155_p3 = pnand %p1146_p1, %p1145_p0 }
  0x2e   : > { %s1003_s29 = sand.u32 (!%p155_p3), 1, %s854_s13  }
  0x2f   : > { %158 = sbr.rel (%p155_p3) target bundleno = 442 (0x1ba), region = 32  ;;  %s588_s30 = sshll.u32 (!%p155_p3), %s1003_s29, 4 }
  0x30   : > { %s161_s5 = scalar_lea.sflag (!%p155_p3), [#allocation3], %s1003_s29  ;;  %s164_s9 = scalar_lea.vmem (!%p155_p3), [#allocation2], %s588_s30 }
  0x36   : > { %841 = dma.done.wait (%p941_p6), %s161_s5, 256  }
  0x37   : > { %843 = vsyncadd (%p941_p6), %s161_s5, 4294967040  ;;  %v1011_v0 = vld [vmem:[%s164_s9] sm:$0xff]  ;;  %v1013_v1 = vld [vmem:[%s164_s9 + $0x8] sm:$0xff]  ;;  %s865_s4 = smov 110   ;;  %s866_s23 = smov 127   ;;  %v867_v9 = vmov 0.0|0.0  }
  0x38   : > { %v194_v2 = vcombine.low %v1013_v1, %v1013_v1  ;;  %v193_v3 = vcombine.low %v1011_v0, %v1011_v0  ;;  %v1021_v4 = vcombine.high %v1011_v0, %v1011_v0  ;;  %v210_v8 = vcombine.high %v1013_v1, %v1013_v1  ;;  %625 = vmatprep.subr.bf16.mxu1 %v867_v9  ;;  %s868_s6 = smov 126   ;;  %s869_s7 = smov 108   ;;  %v327_v13 = vld [vmem:[%s1137_s2] sm:$0xff] }
  0x39   : > { %s870_s8 = smov 109   ;;  %s871_s10 = smov 91   ;;  %v873_v11 = vmov 0.0   ;;  %vm874_vm0 = vmmov 0   ;;  %v875_v12 = vmov 0   ;;  %vm203_vm1 = vcmask 1039360  }
  0x3a   : > { %v701_v5 = vpack.i.bf16 %v194_v2, %v1011_v0  ;;  %v706_v6 = vpack.i.bf16 %v1013_v1, %v193_v3  ;;  %v696_v7 = vpack.i.bf16 %v1013_v1, %v1021_v4  ;;  %v711_v10 = vpack.i.bf16 %v210_v8, %v1011_v0  ;;  %s872_s11 = smov 92   ;;  %407 = vmatprep.mubr.f32.mxu0 %v873_v11  ;;  %s876_s17 = smov 90  }
  0x3b   : > { %614 = vmatprep.mubr.msk.f32.mxu1 %vm874_vm0, %v873_v11  ;;  %761 = vset.pattern.permute.xlu0 %v875_v12  ;;  %vm219_vm2 = vcmask 1031168   ;;  %vm234_vm3 = vcmask 900096   ;;  %vm313_vm4 = vcmask 1043456   ;;  %vm264_vm5 = vcmask 883712   ;;  %s631_s27 = smul.u32 24, %s1003_s29  ;;  %p1147_p11 = scmp.ne.s32.totalorder %s1142_s24, 0 }
  0x3c   : > { %702 = vrot.lane.b32.xlu1 %v701_v5, %s865_s4  ;;  %692 = vrot.lane.b32.xlu0 %v701_v5, %s866_s23  ;;  %vm249_vm6 = vcmask 891904   ;;  %vm294_vm7 = vcmask 744448   ;;  %vm279_vm8 = vcmask 752640   ;;  %vm309_vm9 = vcmask 736256   ;;  %s632_s28 = smul.u32 384, %s919_s16  ;;  %s497_s16 = scalar_lea.sflag [#allocation4], %s1003_s29 }
  0x3d   : > { %vm333_vm10 = vcmask 293888   ;;  %s186_s30 = scalar_lea.vmem [#allocation5], %s631_s27 }
  0x3e   : > { %s511_s5 = sshll.u32 %s186_s30, 4  ;;  %s1093_s5 = int_to_ptr.vmem [resolvable:$true] %s511_s5 }
  0x40   : > { %707 = vrot.lane.b32.xlu1 %v706_v6, %s866_s23  ;;  %697 = vrot.lane.b32.xlu0 %v696_v7, %s868_s6  ;;  %s1091_s23 = scalar_lea.hbm %s1138_s3, %s632_s28 }
  0x44   : > { %717 = vrot.lane.b32.xlu1 %v706_v6, %s865_s4  ;;  %712 = vrot.lane.b32.xlu0 %v711_v10, %s868_s6  ;;  %s796_s6 = scalar_lea.vmem %s1093_s5, 384 }
  0x45   : > { %p797_p6 = scmp.ne.s32.totalorder %s1093_s5, %s796_s6 }
  0x47   : > { %p798_p12 = pnand %p797_p6, %p1147_p11 }
  0x48   : > { %727 = vrot.lane.b32.xlu1 %v701_v5, %s869_s7  ;;  %722 = vrot.lane.b32.xlu0 %v696_v7, %s870_s8 }
  0x49   : > { %p799_p13 = pneg %p798_p12 }
  0x4c   : > { %737 = vrot.lane.b32.xlu1 %v701_v5, %s871_s10  ;;  %732 = vrot.lane.b32.xlu0 %v696_v7, %s872_s11 }
  0x50   : > { %747 = vrot.lane.b32.xlu1 %v706_v6, %s869_s7  ;;  %742 = vrot.lane.b32.xlu0 %v711_v10, %s870_s8  ;;  %s877_s7 = smov [#allocation5]  }
  0x51   : > { %s800_s8 = sshll.u32 %s877_s7, 4  ;;  %s801_s8 = int_to_ptr.vmem [resolvable:$false] %s800_s8 }
  0x52   : > { %p803_p7 = scmp.lt.s32.totalorder %s1093_s5, %s801_s8 }
  0x54   : > { %757 = vrot.lane.b32.xlu1 %v706_v6, %s871_s10  ;;  %752 = vrot.lane.b32.xlu0 %v711_v10, %s872_s11  ;;  %s802_s10 = scalar_lea.vmem %s801_s8, 768 }
  0x55   : > { %p804_p10 = scmp.lt.s32.totalorder %s802_s10, %s796_s6 }
  0x57   : > { %p805_p2 = por %p804_p10, %p803_p7 }
  0x58   : > { %305 = vrot.lane.b32.xlu1 %v1013_v1, %s876_s17  ;;  %303 = vrot.lane.b32.xlu0 %v1021_v4, %s876_s17 }
  0x59   : > { %p806_p4 = pnand %p805_p2, %p799_p13 }
  0x5c   : > { %307 = vrot.lane.b32.xlu1 %v210_v8, %s876_s17  ;;  %301 = vrot.lane.b32.xlu0 %v1011_v0, %s876_s17 }
  0x60   : > { %330 = vperm.xlu0 %761, %v327_v13  }
  0xae   : > { %v703_v14 = vpop.permute.xlu1 %702  ;;  %v693_v15 = vpop.permute.xlu0 %692 }
  0xaf   : > { %v695_v16 = vunpack.i.h.bf16 %v693_v15  ;;  %v694_v17 = vunpack.i.l.bf16 %v693_v15  ;;  %v705_v18 = vunpack.i.h.bf16 %v703_v14  ;;  %v704_v19 = vunpack.i.l.bf16 %v703_v14 }
  0xb1   : > { %v205_v22 = vsel %vm203_vm1, %v694_v17, %v695_v16  ;;  %v236_v28 = vsel %vm234_vm3, %v704_v19, %v705_v18 }
  0xb2   : > { %v708_v20 = vpop.permute.xlu1 %707  ;;  %v698_v21 = vpop.permute.xlu0 %697  ;;  %v315_v31 = vsel %vm313_vm4, %v1021_v4, %v205_v22 }
  0xb3   : > { %v710_v23 = vunpack.i.h.bf16 %v708_v20  ;;  %v709_v24 = vunpack.i.l.bf16 %v708_v20  ;;  %v700_v25 = vunpack.i.h.bf16 %v698_v21  ;;  %v699_v26 = vunpack.i.l.bf16 %v698_v21 }
  0xb5   : > { %v221_v27 = vsel %vm219_vm2, %v699_v26, %v700_v25  ;;  %v204_v33 = vsel %vm203_vm1, %v709_v24, %v694_v17  ;;  %v206_v34 = vsel %vm203_vm1, %v695_v16, %v710_v23 }
  0xb6   : > { %v718_v29 = vpop.permute.xlu1 %717  ;;  %v713_v30 = vpop.permute.xlu0 %712  ;;  %v318_v32 = vsel %vm313_vm4, %v221_v27, %v236_v28  ;;  %v314_v46 = vsel %vm313_vm4, %v1011_v0, %v204_v33  ;;  %v316_v48 = vsel %vm313_vm4, %v1013_v1, %v206_v34 }
  0xb7   : > { %v720_v35 = vunpack.i.h.bf16 %v718_v29  ;;  %v719_v36 = vunpack.i.l.bf16 %v718_v29  ;;  %v715_v37 = vunpack.i.h.bf16 %v713_v30  ;;  %v714_v38 = vunpack.i.l.bf16 %v713_v30 }
  0xb8   : > { %v617_v39 = vpack.c.bf16 %v318_v32, %v315_v31 }
  0xb9   : > { %v220_v40 = vsel %vm219_vm2, %v714_v38, %v699_v26  ;;  %v235_v41 = vsel %vm234_vm3, %v719_v36, %v704_v19  ;;  %v222_v42 = vsel %vm219_vm2, %v700_v25, %v715_v37  ;;  %v237_v43 = vsel %vm234_vm3, %v705_v18, %v720_v35 }
  0xba   : > { %618 = vmatprep.subr.bf16.mxu0 %v617_v39  ;;  %v728_v44 = vpop.permute.xlu1 %727  ;;  %v723_v45 = vpop.permute.xlu0 %722  ;;  %v317_v47 = vsel %vm313_vm4, %v220_v40, %v235_v41  ;;  %v319_v49 = vsel %vm313_vm4, %v222_v42, %v237_v43  ;;  %v326_v39 = vld [vmem:[%s1136_s1] sm:$0xff] }
  0xbb   : > { %v730_v50 = vunpack.i.h.bf16 %v728_v44  ;;  %v729_v51 = vunpack.i.l.bf16 %v728_v44  ;;  %v725_v52 = vunpack.i.h.bf16 %v723_v45  ;;  %v724_v53 = vunpack.i.l.bf16 %v723_v45 }
  0xbc   : > { %v619_v54 = vpack.c.bf16 %v317_v47, %v314_v46  ;;  %v626_v55 = vpack.c.bf16 %v319_v49, %v316_v48 }
  0xbd   : > { %v266_v56 = vsel %vm264_vm5, %v729_v51, %v730_v50  ;;  %v251_v57 = vsel %vm249_vm6, %v724_v53, %v725_v52 }
  0xbe   : > { %620 = vmatpush1.bf16.msra.mxu0 %v619_v54  ;;  %627 = vmatpush3.bf16.msra.mxu1 %v626_v55  ;;  %v738_v58 = vpop.permute.xlu1 %737  ;;  %v733_v59 = vpop.permute.xlu0 %732  ;;  %v321_v4 = vsel %vm313_vm4, %v251_v57, %v266_v56 }
  0xbf   : > { %v740_v60 = vunpack.i.h.bf16 %v738_v58  ;;  %v739_v61 = vunpack.i.l.bf16 %v738_v58  ;;  %v735_v62 = vunpack.i.h.bf16 %v733_v59  ;;  %v734_v63 = vunpack.i.l.bf16 %v733_v59  ;;  %628 = vmatprep.subr.bf16.mxu1 %v867_v9 }
  0xc1   : > { %v296_v0 = vsel %vm294_vm7, %v739_v61, %v740_v60  ;;  %v281_v1 = vsel %vm279_vm8, %v734_v63, %v735_v62 }
  0xc2   : > { %v748_v2 = vpop.permute.xlu1 %747  ;;  %v743_v3 = vpop.permute.xlu0 %742  ;;  %v324_v5 = vsel %vm313_vm4, %v281_v1, %v296_v0 }
  0xc3   : > { %v750_v6 = vunpack.i.h.bf16 %v748_v2  ;;  %v749_v7 = vunpack.i.l.bf16 %v748_v2  ;;  %v745_v8 = vunpack.i.h.bf16 %v743_v3  ;;  %v744_v10 = vunpack.i.l.bf16 %v743_v3 }
  0xc4   : > { %v621_v12 = vpack.c.bf16 %v324_v5, %v321_v4 }
  0xc5   : > { %v265_v13 = vsel %vm264_vm5, %v749_v7, %v729_v51  ;;  %v267_v14 = vsel %vm264_vm5, %v730_v50, %v750_v6  ;;  %v250_v9 = vsel %vm249_vm6, %v744_v10, %v724_v53  ;;  %v252_v15 = vsel %vm249_vm6, %v725_v52, %v745_v8 }
  0xc6   : > { %622 = vmatprep.subr.bf16.mxu0 %v621_v12  ;;  %v758_v16 = vpop.permute.xlu1 %757  ;;  %v753_v17 = vpop.permute.xlu0 %752  ;;  %v320_v28 = vsel %vm313_vm4, %v250_v9, %v265_v13  ;;  %v322_v30 = vsel %vm313_vm4, %v252_v15, %v267_v14 }
  0xc7   : > { %v760_v18 = vunpack.i.h.bf16 %v758_v16  ;;  %v759_v19 = vunpack.i.l.bf16 %v758_v16  ;;  %v755_v20 = vunpack.i.h.bf16 %v753_v17  ;;  %v754_v21 = vunpack.i.l.bf16 %v753_v17 }
  0xc9   : > { %v295_v22 = vsel %vm294_vm7, %v759_v19, %v739_v61  ;;  %v297_v23 = vsel %vm294_vm7, %v740_v60, %v760_v18  ;;  %v280_v24 = vsel %vm279_vm8, %v754_v21, %v734_v63  ;;  %v282_v25 = vsel %vm279_vm8, %v735_v62, %v755_v20 }
  0xca   : > { %v306_v26 = vpop.permute.xlu1 %305  ;;  %v304_v27 = vpop.permute.xlu0 %303  ;;  %v323_v29 = vsel %vm313_vm4, %v280_v24, %v295_v22  ;;  %v325_v31 = vsel %vm313_vm4, %v282_v25, %v297_v23 }
  0xcb   : > { %v311_v32 = vsel %vm309_vm9, %v304_v27, %v306_v26  ;;  %v623_v33 = vpack.c.bf16 %v323_v29, %v320_v28  ;;  %v629_v34 = vpack.c.bf16 %v325_v31, %v322_v30 }
  0xcd   : > { %624 = vmatpush1.bf16.msra.mxu0 %v623_v33  ;;  %630 = vmatpush3.bf16.msra.mxu1 %v629_v34 }
  0xce   : > { %v308_v35 = vpop.permute.xlu1 %307  ;;  %v302_v36 = vpop.permute.xlu0 %301  ;;  %589 = vmatprep.subr.msk.mxu0 %vm313_vm4, %v311_v32  ;;  %612 = vmatprep.subr.mxu1 %v873_v11 }
  0xcf   : > { %v312_v37 = vsel %vm309_vm9, %v306_v26, %v308_v35  ;;  %v310_v38 = vsel %vm309_vm9, %v302_v36, %v304_v27 }
  0xd1   : > { %590 = vmatpush1.msk.msra.mxu0 %vm313_vm4, %v310_v38  ;;  %613 = vmatpush3.msk.msra.mxu1 %vm313_vm4, %v312_v37 }
  0xd2   : > { %591 = vmatmul.mubr.msk.f32.vlgmr.msra.gmra.mrb[0].mxu0 %vm333_vm10, %v326_v39  ;;  %615 = vmatmul.mubr.msk.f32.vlgmr.msra.gmra.mrb[0].mxu1 %vm333_vm10, %v326_v39 }
  0xdf   : > { %v331_v40 = vpop.permute.xlu0 %330 }
 0x1a5   : > { %v409_v41 = vpop.f32.mrb[0].mxu0  ;;  %v480_v11 = vpop.f32.mrb[0].mxu1 }
 0x1a6   : > { %v410_v42 = vadd.f32 %v409_v41, %v331_v40  ;;  %v481_v43 = vadd.f32 %v480_v11, %v331_v40  ;;  %v411_v44 = vpop.f32.mrb[1].mxu0  ;;  %v616_v45 = vpop.f32.mrb[1].mxu1 }
 0x1a7   : > { %v412_v46 = vadd.f32 %v411_v44, %v331_v40 }
 0x1a8   : > { %vm484_vm11 = vcmp.ge.f32.partialorder %v410_v42, 0.0  ;;  %v487_v47 = vmul.f32 0.1, %v410_v42  ;;  %vm486_vm12 = vcmp.ge.f32.partialorder %v481_v43, 0.0  ;;  %v489_v48 = vmul.f32 0.1, %v481_v43 }
 0x1a9   : > { %vm485_vm13 = vcmp.ge.f32.partialorder %v412_v46, 0.0  ;;  %v488_v49 = vmul.f32 0.1, %v412_v46 }
 0x1aa   : > { %v490_v50 = vsel %vm484_vm11, %v410_v42, %v487_v47  ;;  %v492_v51 = vsel %vm486_vm12, %v481_v43, %v489_v48 }
 0x1ab   : > { %493 = vst [vmem:[%s186_s30] sm:$0xff] %v490_v50  ;;  %495 = vst [vmem:[%s186_s30 + $0x10] sm:$0xff] %v492_v51  ;;  %v491_v52 = vsel %vm485_vm13, %v412_v46, %v488_v49 }
 0x1ac   : > { %494 = vst [vmem:[%s186_s30 + $0x8] sm:$0xff] %v491_v52 }
 0x1ad   : > { %809 = shalt.err (!%p806_p4)
}
 0x1ae   : > { %s810_s29 = scalar_lea.hbm %s1091_s23, 384  ;;  %s814_s19 = scalar_lea.hbm %s1138_s3, 768 }
 0x1af   : > { %p811_p5 = scmp.ne.s32.totalorder %s1091_s23, %s810_s29  ;;  %p815_p0 = scmp.lt.u32.totalorder %s1091_s23, %s1138_s3 }
 0x1b0   : > { %p816_p1 = scmp.lt.u32.totalorder %s814_s19, %s810_s29  ;;  %p818_p6 = scmp.lt.u32.totalorder %s810_s29, %s1091_s23 }
 0x1b1   : > { %p812_p8 = pnand %p811_p5, %p1147_p11 }
 0x1b2   : > { %p817_p3 = por %p816_p1, %p815_p0 }
 0x1b3   : > { %p813_p9 = pneg %p812_p8 }
 0x1b4   : > { %p819_p12 = por %p818_p6, %p817_p3 }
 0x1b6   : > { %p820_p13 = pnand %p819_p12, %p813_p9 }
 0x1b8   : > { %823 = shalt.err (!%p820_p13)
}
 0x1b9   : > { %635 = dma.vmem_to_hbm [thread:$0]  (%p1147_p11), %s1093_s5, 384, %s1091_s23, %s497_s16  }
 0x1ba PF: > { %s523_s26 = sand.u32 1, %s850_s12   ;;  %p1148_p7 = scmp.ne.s32.totalorder %s1143_s25, 0 }
 0x1bb   : > { %p1149_p10 = scmp.ge.s32.totalorder %s862_s15, 2  ;;  %s524_s27 = scalar_lea.sflag [#allocation4], %s523_s26 }
 0x1bd   : > { %p642_p2 = pnand %p1149_p10, %p1148_p7 }
 0x1bf   : > { %845 = dma.done.wait (!%p642_p2), %s524_s27, 384  }
 0x1c0   : > { %847 = vsyncadd (!%p642_p2), %s524_s27, 4294966912  ;;  %p16_p4 = scmp.ge.s32.totalorder %s923_s18, 4   ;;  %s1150_s12 = smov %s854_s13 }
 0x1c1   : > { %s1151_s13 = smov %s858_s14  ;;  %s1152_s14 = smov %s935_s21 }
 0x1c2   : > { %s1153_s15 = smov %s923_s18  ;;  %18 = sbr.rel (!%p16_p4) target bundleno = 5 (0x5), region = 77 }
 0x1c9   :  { %529 = vsyncpa [#allocation3], 1 }
 0x1ca   :  { %531 = vsyncpa [#allocation3 + $0x1], 1 }
 0x1cb   :  { %532 = vsyncpa [#allocation4], 1 }
 0x1cc   :  { %534 = vsyncpa [#allocation4 + $0x1], 1 }

</bundles_post_ra>
